<compile_context>
chip_gen: v7x
topology: tpu7x:2x2x1
jax: 0.10.0
libtpu: 0.0.40
codegen_flags: <defaults>
</compile_context>

<pallas_src>
import math

import jax
import jax.numpy as jnp
from jax.experimental import pallas as pl
from jax.experimental.pallas import tpu as pltpu


_C = math.sqrt(2.0 / math.pi)      # sqrt(2/pi)
_CA = _C * 0.044715                # sqrt(2/pi) * 0.044715


def _gelu_kernel(x_ref, o_ref):
    # Compute in f32 (bf16-safe on v5e; cast once on load / once on store).
    # TODO(synk): on v6e/v7x a bf16-native polynomial would cut convert traffic;
    # kept f32 everywhere for accuracy and v5e compatibility.
    x = x_ref[...].astype(jnp.float32)
    # z = sqrt(2/pi) * (x + 0.044715*x^3) = x * (C + C*a*x^2)
    z = x * (_C + _CA * (x * x))
    # tanh is a single EUP op; remaining muls/adds stay on the VPU.
    o_ref[...] = (0.5 * x * (1.0 + jnp.tanh(z))).astype(o_ref.dtype)


def _round_up(n, m):
    return ((n + m - 1) // m) * m


def _tpu_generation_params():
    """(per_buffer_budget_bytes, vmem_limit_cap_bytes, two_tensorcores)."""
    vmem_bytes = 64 * 1024 * 1024  # conservative default if query fails
    try:
        vmem_bytes = int(pltpu.get_tpu_info().vmem_capacity_bytes)
    except Exception:
        pass
    if vmem_bytes <= 96 * 1024 * 1024:
        # v7x-class: 64 MiB VMEM per TC, 2 TensorCores per chip.
        return 4 * 1024 * 1024, 48 * 1024 * 1024, True
    # v5e / v6e class: 128 MiB VMEM, single TensorCore.
    return 8 * 1024 * 1024, 64 * 1024 * 1024, False


def gelu_pallas(x):
    orig_shape = x.shape
    n = x.size
    if n == 0:
        return x
    itemsize = jnp.dtype(x.dtype).itemsize
    # sublane packing multiple for this dtype (f32:8, bf16:16, int8/fp8:32)
    sub = {4: 8, 2: 16, 1: 32}.get(itemsize, 8)

    # --- lane-dense slab: largest lanes = k*128 (k<=64) dividing n ----------
    lanes = None
    for k in range(64, 0, -1):
        cand = k * 128
        if n % cand == 0:
            lanes = cand
            break

    flat = x.reshape(-1)
    pad = 0
    if lanes is None:
        # Rare fallback (element count not divisible by 128): pad once so the
        # slab is still lane-dense and blocks stay bounded.  GELU(0) == 0, so
        # the padding is benign; it is sliced off after the kernel.
        pad = (-n) % 128
        flat = jnp.pad(flat, (0, pad))
        n_eff = n + pad
        for k in range(64, 0, -1):
            cand = k * 128
            if n_eff % cand == 0:
                lanes = cand
                break
    n_eff = n + pad
    rows = n_eff // lanes
    x2d = flat.reshape(rows, lanes)

    # --- generation-aware VMEM budget ---------------------------------------
    per_buf_budget, vmem_cap, two_tc = _tpu_generation_params()
    tm_budget = max(sub, (per_buf_budget // (lanes * itemsize)) // sub * sub)

    # --- row tile / grid -----------------------------------------------------
    if not two_tc:
        # Single TensorCore: the grid is a serial loop; use the largest tile
        # that fits the budget (no artificial splitting).
        tm = rows if rows <= tm_budget else tm_budget
    else:
        # Two TensorCores: aim for an even number of grid steps (>= 2) so both
        # cores get balanced work; ragged last block is masked by Pallas.
        if rows < 2 * sub:
            tm = rows
        else:
            steps = max(2, pl.cdiv(rows, tm_budget))
            if steps % 2:
                steps += 1
            tm = min(tm_budget, _round_up(pl.cdiv(rows, steps), sub))
            if pl.cdiv(rows, tm) % 2 and rows > tm:
                steps = pl.cdiv(rows, tm) + 1
                tm = min(tm_budget, _round_up(pl.cdiv(rows, steps), sub))
    grid = (pl.cdiv(rows, tm),)

    tile_bytes = tm * lanes * itemsize
    # in + out, double-buffered, plus headroom; capped per generation.
    vmem_limit = int(min(vmem_cap, max(16 * 1024 * 1024,
                                       4 * tile_bytes + 8 * 1024 * 1024)))

    out2d = pl.pallas_call(
        _gelu_kernel,
        out_shape=jax.ShapeDtypeStruct((rows, lanes), x.dtype),
        grid=grid,
        in_specs=[pl.BlockSpec((tm, lanes), lambda i: (i, 0))],
        out_specs=pl.BlockSpec((tm, lanes), lambda i: (i, 0)),
        compiler_params=pltpu.CompilerParams(
            dimension_semantics=("parallel",),
            vmem_limit_bytes=vmem_limit,
        ),
        # TODO(synk): optionally add input_output_aliases={0: 0} with a donated
        # input at the jit boundary to halve peak HBM footprint inside an MLP.
    )(x2d)

    out_flat = out2d.reshape(-1)
    if pad:
        out_flat = out_flat[:n]
    return out_flat.reshape(orig_shape)


def gelu_ref(x):
    c = math.sqrt(2.0 / math.pi)
    return 0.5 * x * (1.0 + jnp.tanh(c * (x + 0.044715 * jnp.power(x, 3))))


if __name__ == "__main__":
    key = jax.random.PRNGKey(0)

    # Primary small case consistent with a transformer MLP activation.
    x = jax.random.normal(key, (2, 8, 32), dtype=jnp.float32)
    out = jax.block_until_ready(gelu_pallas(x))
    ref = gelu_ref(x)
    assert out.shape == x.shape and out.dtype == x.dtype
    assert jnp.allclose(out, ref, atol=1e-5, rtol=1e-5), "mismatch vs reference (f32)"

    # Multi-tile path with non-power-of-two element count (k*128 divisor search).
    k1, k2, k3 = jax.random.split(key, 3)
    x_rag = jax.random.normal(k1, (64, 33, 96), dtype=jnp.float32)
    out_rag = jax.block_until_ready(gelu_pallas(x_rag))
    assert jnp.allclose(out_rag, gelu_ref(x_rag), atol=1e-5, rtol=1e-5), "mismatch (multi-tile)"

    # bf16 path: compute in f32 in-kernel, cast on store.
    x_bf = jax.random.normal(k2, (16, 24, 64), dtype=jnp.bfloat16)
    out_bf = jax.block_until_ready(gelu_pallas(x_bf))
    ref_bf = gelu_ref(x_bf.astype(jnp.float32))
    assert out_bf.dtype == jnp.bfloat16
    assert jnp.allclose(out_bf.astype(jnp.float32), ref_bf, atol=2e-2, rtol=2e-2), "mismatch (bf16)"

    # Fallback path: 1-D, not divisible by 128 (padded slab, sliced after).
    x_odd = jax.random.normal(k3, (1000,), dtype=jnp.float32)
    out_odd = jax.block_until_ready(gelu_pallas(x_odd))
    assert out_odd.shape == x_odd.shape
    assert jnp.allclose(out_odd, gelu_ref(x_odd), atol=1e-5, rtol=1e-5), "mismatch (1-D fallback)"

    print("KERNEL_OK")
</pallas_src>

<mosaic_0001>
module attributes {stable_mosaic.version = 11 : i64} {
  func.func @_gelu_kernel(%arg0: i32, %arg1: memref<1x512xf32, #tpu.memory_space<vmem>>, %arg2: memref<1x512xf32, #tpu.memory_space<vmem>>) attributes {dimension_semantics = [#tpu.dimension_semantics<parallel>], iteration_bounds = array<i64: 1>, scalar_prefetch = 0 : i64, scratch_operands = 0 : i64, tpu.core_type = #tpu.core_type<tc>, window_params = [{transform_indices = @transform_0, window_bounds = array<i64: 1, 512>}, {transform_indices = @transform_1, window_bounds = array<i64: 1, 512>}]} {
    %c0 = arith.constant 0 : index
    %c0_0 = arith.constant 0 : index
    %0 = vector.load %arg1[%c0, %c0_0] : memref<1x512xf32, #tpu.memory_space<vmem>>, vector<1x512xf32>
    %1 = arith.mulf %0, %0 : vector<1x512xf32>
    %cst = arith.constant 0.0356774069 : f32
    %2 = vector.broadcast %cst : f32 to vector<1x512xf32>
    %3 = arith.mulf %2, %1 : vector<1x512xf32>
    %cst_1 = arith.constant 0.797884583 : f32
    %4 = vector.broadcast %cst_1 : f32 to vector<1x512xf32>
    %5 = arith.addf %4, %3 : vector<1x512xf32>
    %6 = arith.mulf %0, %5 : vector<1x512xf32>
    %cst_2 = arith.constant 5.000000e-01 : f32
    %7 = vector.broadcast %cst_2 : f32 to vector<1x512xf32>
    %8 = arith.mulf %7, %0 : vector<1x512xf32>
    %9 = math.tanh %6 : vector<1x512xf32>
    %cst_3 = arith.constant 1.000000e+00 : f32
    %10 = vector.broadcast %cst_3 : f32 to vector<1x512xf32>
    %11 = arith.addf %10, %9 : vector<1x512xf32>
    %12 = arith.mulf %8, %11 : vector<1x512xf32>
    %c0_4 = arith.constant 0 : index
    %c0_5 = arith.constant 0 : index
    %13 = vector.load %arg2[%c0_4, %c0_5] : memref<1x512xf32, #tpu.memory_space<vmem>>, vector<1x512xf32>
    tpu.vector_store %arg2[%c0_4, %c0_5], %12 {strides = array<i32>} : memref<1x512xf32, #tpu.memory_space<vmem>>, vector<1x512xf32>,
    return
  }
  func.func @transform_0(%arg0: i32) -> (i32, i32) {
    %c0_i32 = arith.constant 0 : i32
    %c0_i32_0 = arith.constant 0 : i32
    return %arg0, %c0_i32 : i32, i32
  }
  func.func @transform_1(%arg0: i32) -> (i32, i32) {
    %c0_i32 = arith.constant 0 : i32
    %c0_i32_0 = arith.constant 0 : i32
    return %arg0, %c0_i32 : i32, i32
  }
}

</mosaic_0001>

<bundles_post_ra>
// kernel: tpu_custom_call.1
= control target key start
LH: loop header
LB: loop body
LE: loop exit
PB: predicated region body
PF: predicated region fallthrough
CT: control target
= control target key end

     0   :  { %6 = vsyncpa [#allocation3], 0  ;;  %s138_s0 = inlined_call_operand.hbm [shape: f32[1,512], index: 0, kind: input, shape index: {}]   ;;  %s139_s1 = inlined_call_operand.hbm [shape: f32[1,512], index: 1, kind: output, shape index: {}]  }
   0x1   :  { %7 = vsyncpa [#allocation4], 0  ;;  %s102_s6 = smov [#allocation2]   ;;  %s54_s10 = scalar_lea.hbm %s138_s0, 64 }
   0x2   :  { %s14_s7 = sshll.u32 %s102_s6, 4  ;;  %p55_p0 = scmp.ne.s32.totalorder %s138_s0, %s54_s10  ;;  %s15_s7 = int_to_ptr.vmem [resolvable:$true] %s14_s7 }
   0x3   :  { %p58_p1 = scmp.lt.u32.totalorder %s54_s10, %s138_s0 }
   0x5   :  { %p60_p2 = pnand %p58_p1, %p55_p0 }
   0x7   :  { %63 = shalt.err (!%p60_p2)
}
   0x8   :  { %s64_s15 = scalar_lea.vmem %s15_s7, 64  ;;  %p69_p4 = scmp.lt.s32.totalorder %s15_s7, %s15_s7 }
   0x9   :  { %p65_p3 = scmp.ne.s32.totalorder %s15_s7, %s64_s15  ;;  %p70_p5 = scmp.lt.s32.totalorder %s64_s15, %s64_s15 }
   0xb   :  { %p71_p6 = por %p70_p5, %p69_p4 }
   0xd   :  { %p72_p7 = pnand %p71_p6, %p65_p3 }
   0xf   :  { %75 = shalt.err (!%p72_p7)
}
  0x10   :  { %17 = dma.hbm_to_vmem [thread:$0]  %s138_s0, 64, %s15_s7, [#allocation3]  }
  0x11   :  { %98 = dma.done.wait [#allocation3], 64  }
  0x12   :  { %99 = vsyncadd [#allocation3], 4294967232  ;;  %v21_v0 = vld [vmem:[#allocation2] sm:$0xf]  ;;  %v30_v5 = vlaneseq  ;;  %s103_s18 = smov [#allocation5]  }
  0x13   :  { %v22_v1 = vmul.f32 %v21_v0, %v21_v0  ;;  %v26_v6 = vmul.f32 0.5, %v21_v0  ;;  %s41_s19 = sshll.u32 %s103_s18, 4  ;;  %s42_s19 = int_to_ptr.vmem [resolvable:$true] %s41_s19 }
  0x14   :  { %vm32_vm0 = vcmp.lt.s32.totalorder %v30_v5, 512  ;;  %s76_s20 = scalar_lea.vmem %s42_s19, 64  ;;  %p81_p9 = scmp.lt.s32.totalorder %s42_s19, %s42_s19 }
  0x15   :  { %v23_v2 = vmul.f32 0.035677407, %v22_v1  ;;  %p77_p8 = scmp.ne.s32.totalorder %s42_s19, %s76_s20  ;;  %p82_p10 = scmp.lt.s32.totalorder %s76_s20, %s76_s20 }
  0x17   :  { %v24_v3 = vadd.f32 0.7978846, %v23_v2  ;;  %p83_p11 = por %p82_p10, %p81_p9 }
  0x19   :  { %v25_v4 = vmul.f32 %v24_v3, %v21_v0  ;;  %p84_p12 = pnand %p83_p11, %p77_p8 }
  0x1b   :  { %52 = vtanh.f32 %v25_v4 }
  0x25   :  { %v53_v7 = vpop.eup %52 }
  0x26   :  { %v28_v8 = vadd.f32 1.0, %v53_v7 }
  0x28   :  { %v29_v9 = vmul.f32 %v28_v8, %v26_v6 }
  0x2a   :  { %34 = vst.msk [vmem:[#allocation5] sm:$0xf] %vm32_vm0, %v29_v9 }
  0x2b   :  { %87 = shalt.err (!%p84_p12)
}
  0x2c   :  { %s88_s22 = scalar_lea.hbm %s139_s1, 64 }
  0x2d   :  { %p89_p13 = scmp.ne.s32.totalorder %s139_s1, %s88_s22  ;;  %p92_p0 = scmp.lt.u32.totalorder %s88_s22, %s139_s1 }
  0x2f   :  { %p94_p1 = pnand %p92_p0, %p89_p13 }
  0x31   :  { %97 = shalt.err (!%p94_p1)
}
  0x32   :  { %44 = dma.vmem_to_hbm [thread:$0]  %s42_s19, 64, %s139_s1, [#allocation4]  }
  0x33   :  { %100 = dma.done.wait [#allocation4], 64  }
  0x34   :  { %101 = vsyncadd [#allocation4], 4294967232 }
  0x35   :  { %48 = vsyncpa [#allocation3], 1 }
  0x36   :  { %49 = vsyncpa [#allocation4], 1 }

</bundles_post_ra>
